<compile_context>
chip_gen: v7x
topology: tpu7x:2x2x1
jax: 0.10.0
libtpu: 0.0.40
codegen_flags: <defaults>
</compile_context>

<pallas_src>
import functools

import jax
import jax.numpy as jnp
from jax.experimental import pallas as pl
from jax.experimental.pallas import tpu as pltpu


def _rmsnorm_kernel(x_ref, o_ref, *, eps):
    # x_ref: (row_tile, C); reduce over the lane (feature) axis per row.
    x = x_ref[...]
    xf = x.astype(jnp.float32)
    ms = jnp.mean(xf * xf, axis=-1, keepdims=True)        # (row_tile, 1) f32
    inv = 1.0 / (jnp.sqrt(ms) + eps)                       # per-row column
    # Scale in the native dtype: no second full (tile, C) f32 temp on the
    # output path (matters for bf16 blocks on v7x's 64 MiB VMEM).
    o_ref[...] = (x * inv.astype(x.dtype)).astype(o_ref.dtype)


def _sublane_multiple(dtype):
    itemsize = jnp.dtype(dtype).itemsize
    # 8 rows for 32-bit, 16 for 16-bit (bf16), 32 for 8-bit dtypes.
    return max(8, 32 // max(1, itemsize))


def _pick_row_tile(rows, c, dtype, min_steps=8):
    """Choose a sublane-aligned row tile.

    Big enough to amortize the ~0.35 us/grid-step overhead (block budget
    ~8 MiB for 32-bit inputs, ~4 MiB for 16-bit), but small enough to give at
    least `min_steps` grid steps whenever the row count allows it, so DMA
    overlaps compute/writeback and both v7x TensorCores get work.
    """
    sub = _sublane_multiple(dtype)
    itemsize = jnp.dtype(dtype).itemsize

    if rows <= sub:
        return rows                     # single full-extent block (always legal)

    if itemsize >= 4:
        block_budget = 8 << 20
    elif itemsize == 2:
        block_budget = 4 << 20
    else:
        block_budget = 2 << 20

    # Budget cap: biggest sublane-aligned tile that fits the block budget.
    by_vmem = max(1, block_budget // max(1, c * itemsize))
    by_vmem = max(sub, (by_vmem // sub) * sub)

    # Step floor: tile small enough for >= min_steps grid steps (if possible).
    by_steps = max(sub, (pl.cdiv(rows, min_steps) // sub) * sub)

    tile = min(by_vmem, by_steps)
    if tile >= rows:
        return rows
    return tile


def _vmem_limit_bytes():
    # Generation-aware scoped-VMEM limit: 64 MiB on v5e/v6e (128 MiB physical),
    # ~48 MiB on v7x (64 MiB physical) to leave headroom for internal scratch.
    cap = None
    try:
        cap = getattr(pltpu.get_tpu_info(), "vmem_capacity_bytes", None)
    except Exception:
        cap = None
    if not cap:
        cap = 64 << 20
    return int(max(32 << 20, min(64 << 20, (cap * 3) // 4)))


def rmsnorm(x, eps=1e-08, row_tile=None):
    B, T, C = x.shape
    rows = B * T
    x2d = x.reshape(rows, C)

    sub = _sublane_multiple(x.dtype)
    if row_tile is None:
        tile = _pick_row_tile(rows, C, x.dtype)
    else:
        # Enforce dtype sublane alignment on caller-supplied tiles.
        tile = max(sub, (int(row_tile) // sub) * sub)
        if tile >= rows:
            tile = rows

    # Ragged last block is handled by Pallas: out-of-bounds rows read garbage
    # (harmless -- each row is independent) and their writes are masked, so no
    # jnp.pad / slice HBM round trip is needed.
    grid = pl.cdiv(rows, tile)

    # TODO(synk): for production shapes with C < 128 (not the LLM case), rows
    # should be folded into the lane dimension to avoid masked partial stores.
    kernel = functools.partial(_rmsnorm_kernel, eps=eps)
    out2d = pl.pallas_call(
        kernel,
        out_shape=jax.ShapeDtypeStruct((rows, C), x.dtype),
        grid_spec=pltpu.PrefetchScalarGridSpec(
            num_scalar_prefetch=0,
            grid=(grid,),
            in_specs=[pl.BlockSpec((tile, C), lambda i: (i, 0))],
            out_specs=pl.BlockSpec((tile, C), lambda i: (i, 0)),
        ),
        compiler_params=pltpu.CompilerParams(
            dimension_semantics=("parallel",),
            vmem_limit_bytes=_vmem_limit_bytes(),
        ),
    )(x2d)

    return out2d.reshape(B, T, C)


if __name__ == "__main__":
    key = jax.random.PRNGKey(0)
    B, T, C = 2, 8, 32
    x = jax.random.normal(key, (B, T, C), dtype=jnp.float32)

    out = rmsnorm(x)
    jax.block_until_ready(out)

    # Reference (plain JAX, mirrors the PyTorch forward exactly).
    rms = jnp.sqrt(jnp.mean(x ** 2, axis=-1, keepdims=True))
    ref = x / (rms + 1e-08)
    assert out.shape == (B, T, C)
    assert jnp.allclose(out, ref, atol=1e-5, rtol=1e-5)

    print("KERNEL_OK")
</pallas_src>

<mosaic_0001>
module attributes {stable_mosaic.version = 11 : i64} {
  func.func @_rmsnorm_kernel(%arg0: i32, %arg1: memref<8x32xf32, #tpu.memory_space<vmem>>, %arg2: memref<8x32xf32, #tpu.memory_space<vmem>>) attributes {dimension_semantics = [#tpu.dimension_semantics<parallel>], iteration_bounds = array<i64: 2>, scalar_prefetch = 0 : i64, scratch_operands = 0 : i64, tpu.core_type = #tpu.core_type<tc>, window_params = [{transform_indices = @transform_0, window_bounds = array<i64: 8, 32>}, {transform_indices = @transform_1, window_bounds = array<i64: 8, 32>}]} {
    %c0 = arith.constant 0 : index
    %c0_0 = arith.constant 0 : index
    %0 = vector.load %arg1[%c0, %c0_0] : memref<8x32xf32, #tpu.memory_space<vmem>>, vector<8x32xf32>
    %1 = arith.mulf %0, %0 : vector<8x32xf32>
    %cst = arith.constant dense<0.000000e+00> : vector<8xf32>
    %2 = vector.multi_reduction <add>, %1, %cst [1] : vector<8x32xf32> to vector<8xf32>
    %3 = vector.shape_cast %2 : vector<8xf32> to vector<8x1xf32>
    %cst_1 = arith.constant 3.200000e+01 : f32
    %4 = vector.broadcast %cst_1 : f32 to vector<8x1xf32>
    %5 = arith.divf %3, %4 : vector<8x1xf32>
    %6 = math.sqrt %5 : vector<8x1xf32>
    %cst_2 = arith.constant 9.99999993E-9 : f32
    %7 = vector.broadcast %cst_2 : f32 to vector<8x1xf32>
    %8 = arith.addf %6, %7 : vector<8x1xf32>
    %cst_3 = arith.constant 1.000000e+00 : f32
    %9 = vector.broadcast %cst_3 : f32 to vector<8x1xf32>
    %10 = arith.divf %9, %8 : vector<8x1xf32>
    %11 = vector.broadcast %10 : vector<8x1xf32> to vector<8x32xf32>
    %12 = arith.mulf %0, %11 : vector<8x32xf32>
    %c0_4 = arith.constant 0 : index
    %c0_5 = arith.constant 0 : index
    %13 = vector.load %arg2[%c0_4, %c0_5] : memref<8x32xf32, #tpu.memory_space<vmem>>, vector<8x32xf32>
    tpu.vector_store %arg2[%c0_4, %c0_5], %12 {strides = array<i32>} : memref<8x32xf32, #tpu.memory_space<vmem>>, vector<8x32xf32>,
    return
  }
  func.func @transform_0(%arg0: i32) -> (i32, i32) {
    %c0_i32 = arith.constant 0 : i32
    %c0_i32_0 = arith.constant 0 : i32
    return %arg0, %c0_i32 : i32, i32
  }
  func.func @transform_1(%arg0: i32) -> (i32, i32) {
    %c0_i32 = arith.constant 0 : i32
    %c0_i32_0 = arith.constant 0 : i32
    return %arg0, %c0_i32 : i32, i32
  }
}

</mosaic_0001>

<bundles_post_ra>
// kernel: tpu_custom_call.1
= control target key start
LH: loop header
LB: loop body
LE: loop exit
PB: predicated region body
PF: predicated region fallthrough
CT: control target
= control target key end

     0   :  { %6 = vsyncpa [#allocation3], 0  ;;  %s571_s0 = inlined_call_operand.hbm [shape: f32[16,32], index: 0, kind: input, shape index: {}]   ;;  %s572_s1 = inlined_call_operand.hbm [shape: f32[16,32], index: 1, kind: output, shape index: {}]  }
   0x1   :  { %8 = vsyncpa [#allocation3 + $0x1], 0 }
   0x2   :  { %9 = vsyncpa [#allocation4], 0 }
   0x3   :  { %11 = vsyncpa [#allocation4 + $0x1], 0  ;;  %s408_s6 = smov 0   ;;  %s410_s7 = smov 0  }
   0x4   :  { %s412_s8 = smov 0   ;;  %s414_s9 = smov 0  }
   0x5 LB: > { %s429_s10 = sadd.s32 4294967295, %s394_s9   ;;  %s236_s11 = sadd.s32 4294967294, %s394_s9   ;;  %s394_s9 = sphi %s414_s9, %s587_s9   ;;  %s390_s8 = sphi %s412_s8, %s586_s8   ;;  %s386_s7 = sphi %s410_s7, %s585_s7   ;;  %s382_s6 = sphi %s408_s6, %s584_s6  }
   0x6   : > { %s433_s12 = sadd.s32 1, %s394_s9   ;;  %s24_s13 = sadd.s32 1, %s390_s8 }
   0x7   : > { %s21_s14 = ssub.s32 %s394_s9, %s433_s12  ;;  %p31_p0 = scmp.ne.s32.totalorder %s390_s8, %s386_s7 }
   0x8   : > { %p22_p1 = scmp.eq.s32.totalorder %s21_s14, 0  ;;  %p32_p2 = scmp.eq.s32.totalorder %s394_s9, 0 }
   0x9   : > { %p37_p3 = scmp.ne.s32.totalorder %s386_s7, %s382_s6  ;;  %p38_p4 = scmp.eq.s32.totalorder %s429_s10, 0 }
   0xa   : > { %s445_s15 = scalar_select %p22_p1, %s390_s8, %s24_s13  }
   0xb   : > { %p447_p5 = por %p32_p2, %p31_p0  ;;  %p451_p6 = por %p38_p4, %p37_p3 }
   0xc   : > { %p61_p7 = scmp.eq.s32.totalorder %s429_s10, 1  ;;  %p67_p8 = scmp.eq.s32.totalorder %s236_s11, 1 }
   0xd   : > { %p260_p10 = scmp.lt.s32.totalorder %s394_s9, 2  ;;  %s87_s20 = sand.u32 1, %s390_s8  }
   0xe   : > { %p458_p11 = por %p61_p7, %p31_p0  ;;  %p462_p12 = por %p67_p8, %p37_p3 }
   0xf   : > { %s240_s21 = sshll.u32 %s394_s9, 7  ;;  %s239_s22 = sshll.u32 %s87_s20, 3 }
  0x10   : > { %s576_s18 = scalar_select %p458_p11, 1, 0 }
  0x11   : > { %s577_s19 = scalar_select %p462_p12, 1, 0 }
  0x12   : > { %s471_s25 = scalar_lea.hbm %s571_s0, %s240_s21  ;;  %s91_s26 = scalar_lea.vmem [#allocation2], %s239_s22 }
  0x13   : > { %s98_s27 = sshll.u32 %s91_s26, 4  ;;  %p475_p13 = pnand %p260_p10, %p447_p5  ;;  %s479_s27 = int_to_ptr.vmem [resolvable:$true] %s98_s27 }
  0x14   : > { %s88_s29 = scalar_lea.sflag [#allocation3], %s87_s20  ;;  %s298_s30 = scalar_lea.hbm %s471_s25, 128 }
  0x15   : > { %p299_p2 = scmp.ne.s32.totalorder %s471_s25, %s298_s30  ;;  %p300_p3 = pneg %p475_p13 }
  0x16   : > { %s303_s4 = scalar_lea.hbm %s571_s0, 256  ;;  %p304_p5 = scmp.lt.u32.totalorder %s471_s25, %s571_s0 }
  0x17   : > { %p301_p4 = pnand %p300_p3, %p299_p2  ;;  %p305_p8 = scmp.lt.u32.totalorder %s303_s4, %s298_s30 }
  0x18   : > { %p307_p9 = scmp.lt.u32.totalorder %s298_s30, %s471_s25 }
  0x19   : > { %p302_p7 = pneg %p301_p4  ;;  %p306_p10 = por %p305_p8, %p304_p5 }
  0x1b   : > { %p308_p0 = por %p307_p9, %p306_p10 }
  0x1d   : > { %p309_p1 = pnand %p308_p0, %p302_p7 }
  0x1f   : > { %312 = shalt.err (!%p309_p1)
}
  0x20   : > { %s313_s13 = scalar_lea.vmem %s479_s27, 128  ;;  %s396_s14 = smov [#allocation2]  }
  0x21   : > { %p314_p2 = scmp.ne.s32.totalorder %s479_s27, %s313_s13  ;;  %s318_s16 = sshll.u32 %s396_s14, 4  ;;  %s319_s16 = int_to_ptr.vmem [resolvable:$false] %s318_s16 }
  0x22   : > { %s320_s20 = scalar_lea.vmem %s319_s16, 256  ;;  %p321_p11 = scmp.lt.s32.totalorder %s479_s27, %s319_s16 }
  0x23   : > { %p316_p4 = pnand %p314_p2, %p300_p3  ;;  %p322_p5 = scmp.lt.s32.totalorder %s320_s20, %s313_s13 }
  0x25   : > { %p317_p12 = pneg %p316_p4  ;;  %p323_p8 = por %p322_p5, %p321_p11 }
  0x27   : > { %p324_p9 = pnand %p323_p8, %p317_p12 }
  0x29   : > { %327 = shalt.err (!%p324_p9)
}
  0x2a   : > { %255 = dma.hbm_to_vmem [thread:$0]  (!%p475_p13), %s471_s25, 128, %s479_s27, %s88_s29  }
  0x2b   : > { %p579_p0 = scmp.lt.s32.totalorder %s394_s9, 3  ;;  %p580_p1 = scmp.ge.s32.totalorder %s394_s9, 1 }
  0x2d   : > { %p104_p3 = pnand %p580_p1, %p579_p0 }
  0x2e   : > { %s513_s21 = sand.u32 (!%p104_p3), 1, %s386_s7  }
  0x2f   : > { %107 = sbr.rel (%p104_p3) target bundleno = 247 (0xf7), region = 24  ;;  %s242_s22 = sshll.u32 (!%p104_p3), %s513_s21, 3 }
  0x30   : > { %s110_s23 = scalar_lea.sflag (!%p104_p3), [#allocation3], %s513_s21  ;;  %s113_s24 = scalar_lea.vmem (!%p104_p3), [#allocation2], %s242_s22 }
  0x36   : > { %373 = dma.done.wait (%p451_p6), %s110_s23, 128  }
  0x37   : > { %375 = vsyncadd (%p451_p6), %s110_s23, 4294967168  ;;  %v132_v0 = vld [vmem:[%s113_s24] sm:$0xff]  ;;  %vm134_vm0 = vcmask 261120   ;;  %s245_s17 = sshll.u32 %s429_s10, 7  ;;  %s131_s25 = scalar_lea.vmem [#allocation5], %s242_s22 }
  0x38   : > { %v133_v1 = vmul.f32 %v132_v0, %v132_v0  ;;  %s166_s26 = sshll.u32 %s131_s25, 4  ;;  %s526_s29 = scalar_lea.hbm %s572_s1, %s245_s17  ;;  %s528_s26 = int_to_ptr.vmem [resolvable:$true] %s166_s26 }
  0x39   : > { %s153_s30 = scalar_lea.sflag [#allocation4], %s513_s21  ;;  %s328_s2 = scalar_lea.vmem %s528_s26, 128 }
  0x3a   : > { %v135_v2 = vsel %vm134_vm0, %v133_v1, 0.0  ;;  %p329_p6 = scmp.ne.s32.totalorder %s528_s26, %s328_s2  ;;  %p581_p11 = scmp.ne.s32.totalorder %s576_s18, 0 }
  0x3b   : > { %136 = vadd.xlane.f32.xlu0 %v135_v2  ;;  %s397_s10 = smov [#allocation5]  }
  0x3c   : > { %p330_p12 = pnand %p329_p6, %p581_p11  ;;  %s332_s3 = sshll.u32 %s397_s10, 4  ;;  %s333_s3 = int_to_ptr.vmem [resolvable:$false] %s332_s3 }
  0x3d   : > { %s334_s4 = scalar_lea.vmem %s333_s3, 256  ;;  %p335_p7 = scmp.lt.s32.totalorder %s528_s26, %s333_s3 }
  0x3e   : > { %p331_p13 = pneg %p330_p12  ;;  %p336_p10 = scmp.lt.s32.totalorder %s334_s4, %s328_s2 }
  0x40   : > { %p337_p2 = por %p336_p10, %p335_p7 }
  0x42   : > { %p338_p4 = pnand %p337_p2, %p331_p13 }
  0xc8   : > { %v137_v3 = vpop.xlane.xlu0 %136 }
  0xc9   : > { %v139_v4 = vmul.f32 0.03125, %v137_v3 }
  0xcb   : > { %294 = vrsqrt.f32 %v139_v4  ;;  %vm142_vm1 = vcmp.eq.f32.partialorder %v139_v4, inf  ;;  %v145_v7 = vand.u32 2147483648, %v139_v4  ;;  %vm144_vm2 = vcmp.eq.f32.partialorder %v139_v4, 0.0 }
  0xd5   : > { %v295_v5 = vpop.eup %294 }
  0xd6   : > { %v141_v6 = vmul.f32 %v295_v5, %v139_v4 }
  0xd8   : > { %v143_v8 = vsel %vm142_vm1, %v139_v4, %v141_v6 }
  0xd9   : > { %v146_v9 = vsel %vm144_vm2, %v145_v7, %v143_v8 }
  0xda   : > { %v147_v10 = vadd.f32 1e-08, %v146_v9 }
  0xdc   : > { %296 = vrcp.f32 %v147_v10 }
  0xe6   : > { %v297_v11 = vpop.eup %296 }
  0xe7   : > { %v150_v12 = vmul.f32 %v297_v11, %v132_v0 }
  0xe9   : > { %151 = vst.msk [vmem:[%s131_s25] sm:$0xff] %vm134_vm0, %v150_v12 }
  0xea   : > { %341 = shalt.err (!%p338_p4)
}
  0xeb   : > { %s342_s5 = scalar_lea.hbm %s526_s29, 128  ;;  %s346_s14 = scalar_lea.hbm %s572_s1, 256 }
  0xec   : > { %p343_p5 = scmp.ne.s32.totalorder %s526_s29, %s342_s5  ;;  %p347_p0 = scmp.lt.u32.totalorder %s526_s29, %s572_s1 }
  0xed   : > { %p348_p1 = scmp.lt.u32.totalorder %s346_s14, %s342_s5  ;;  %p350_p6 = scmp.lt.u32.totalorder %s342_s5, %s526_s29 }
  0xee   : > { %p344_p8 = pnand %p343_p5, %p581_p11 }
  0xef   : > { %p349_p3 = por %p348_p1, %p347_p0 }
  0xf0   : > { %p345_p9 = pneg %p344_p8 }
  0xf1   : > { %p351_p12 = por %p350_p6, %p349_p3 }
  0xf3   : > { %p352_p13 = pnand %p351_p12, %p345_p9 }
  0xf5   : > { %355 = shalt.err (!%p352_p13)
}
  0xf6   : > { %250 = dma.vmem_to_hbm [thread:$0]  (%p581_p11), %s528_s26, 128, %s526_s29, %s153_s30  }
  0xf7 PF: > { %s178_s21 = sand.u32 1, %s382_s6   ;;  %p582_p7 = scmp.ne.s32.totalorder %s577_s19, 0 }
  0xf8   : > { %p583_p10 = scmp.ge.s32.totalorder %s394_s9, 2  ;;  %s179_s22 = scalar_lea.sflag [#allocation4], %s178_s21 }
  0xfa   : > { %p257_p2 = pnand %p583_p10, %p582_p7 }
  0xfc   : > { %377 = dma.done.wait (!%p257_p2), %s179_s22, 128  }
  0xfd   : > { %379 = vsyncadd (!%p257_p2), %s179_s22, 4294967168  ;;  %p14_p4 = scmp.ge.s32.totalorder %s433_s12, 4   ;;  %s584_s6 = smov %s386_s7 }
  0xfe   : > { %s585_s7 = smov %s390_s8  ;;  %s586_s8 = smov %s445_s15 }
  0xff   : > { %s587_s9 = smov %s433_s12  ;;  %16 = sbr.rel (!%p14_p4) target bundleno = 5 (0x5), region = 69 }
 0x106   :  { %184 = vsyncpa [#allocation3], 1 }
 0x107   :  { %186 = vsyncpa [#allocation3 + $0x1], 1 }
 0x108   :  { %187 = vsyncpa [#allocation4], 1 }
 0x109   :  { %189 = vsyncpa [#allocation4 + $0x1], 1 }

</bundles_post_ra>
